<compile_context>
chip_gen: v7x
topology: tpu7x:2x2x1
jax: 0.10.0
libtpu: 0.0.40
codegen_flags: <defaults>
</compile_context>

<pallas_src>
import math

import jax
import jax.numpy as jnp
from jax import lax
from jax.experimental import pallas as pl
from jax.experimental.pallas import tpu as pltpu


# ----------------------------------------------------------------------------
# Kernel 1: Conv1d(40->256,k=3,s=1,p=1) + BN(eval) + ReLU + MaxPool1d(3,3)
#           (im2col matmul in bf16, time-major output)
# ----------------------------------------------------------------------------
def conv_bn_relu_pool_kernel(x_ref, w_ref, scale_ref, shift_ref, out_ref):
    # x_ref:   (W, BB, KCP) f32 im2col windows (time-major, lane-padded to 128)
    # w_ref:   (KCP, Cout)  bf16 flattened conv weight (k*Cin order, zero-pad)
    # scale/shift: (1, Cout) f32 folded conv-bias + BatchNorm(eval) affine
    # out_ref: (T, BB, Cout) f32 pooled features, time-major
    Wn, BB, KCP = x_ref.shape
    T, _, Cout = out_ref.shape

    # Reshape in f32 (proven layout path), then cast operands to bf16 for a
    # single-pass MXU matmul with f32 accumulation.
    x = x_ref[...].reshape(Wn * BB, KCP).astype(jnp.bfloat16)
    y = jnp.dot(x, w_ref[...], preferred_element_type=jnp.float32)
    y = jnp.maximum(y * scale_ref[...] + shift_ref[...], 0.0)       # BN + ReLU

    # MaxPool1d(kernel=3, stride=3) over time: one reshape + two VPU maxes.
    y = y[:3 * T * BB].reshape(T, 3, BB, Cout)
    pooled = jnp.maximum(jnp.maximum(y[:, 0], y[:, 1]), y[:, 2])
    out_ref[...] = pooled.astype(out_ref.dtype)


# ----------------------------------------------------------------------------
# Kernel 2: 2-layer LSTM(256) (wavefront-fused) + mean/var stat-pool
#           + Linear(512->128) + ReLU + L2 normalize
# ----------------------------------------------------------------------------
def _sigmoid_fast(x):
    # sigmoid(x) = 0.5*(tanh(0.5*x)+1): one EUP op instead of exp + reciprocal.
    return 0.5 * jnp.tanh(0.5 * x) + 0.5


def lstm_statpool_fc_kernel(x_ref, wih_ref, whh_ref, b_ref, wfc_ref, bfc_ref,
                            out_ref, gx_sc, seq_sc):
    # x_ref:   (T, BB, H)   time-major pooled features (f32)
    # wih_ref: (L, H, 4H)   W_ih^T per layer, bf16 (PyTorch gate order i,f,g,o)
    # whh_ref: (L, H, 4H)   W_hh^T per layer, bf16
    # b_ref:   (L, 1, 4H)   b_ih + b_hh per layer (f32)
    # wfc_ref: (2H, F) f32, bfc_ref: (1, F) f32
    # out_ref: (BB, F) f32
    # gx_sc:   (T, BB, 4H)  hoisted layer-0 input-projection gates (f32)
    # seq_sc:  (T, BB, H)   layer-1 output sequence for stat pooling (f32)
    T, BB, H = x_ref.shape
    H4 = 4 * H

    # --- hoisted layer-0 input projection + bias: ONE (T*BB,H)@(H,4H) matmul,
    # off the serial h-chain (bf16 operands, f32 accumulation).
    xin = x_ref[...].reshape(T * BB, H).astype(jnp.bfloat16)
    gx = jnp.dot(xin, wih_ref[0], preferred_element_type=jnp.float32) + b_ref[0]
    gx_sc[...] = gx.reshape(T, BB, H4)

    def cell(gates, c):
        i = _sigmoid_fast(gates[:, 0 * H:1 * H])
        f = _sigmoid_fast(gates[:, 1 * H:2 * H])
        g = jnp.tanh(gates[:, 2 * H:3 * H])
        o = _sigmoid_fast(gates[:, 3 * H:4 * H])
        c_new = f * c + i * g
        h_new = o * jnp.tanh(c_new)
        return h_new, c_new

    def l0_step(t, h0, c0):
        gates0 = gx_sc[t] + jnp.dot(h0.astype(jnp.bfloat16), whh_ref[0],
                                    preferred_element_type=jnp.float32)
        return cell(gates0, c0)

    def l1_step(s, h0_in, h1, c1):
        gates1 = (jnp.dot(h0_in.astype(jnp.bfloat16), wih_ref[1],
                          preferred_element_type=jnp.float32)
                  + jnp.dot(h1.astype(jnp.bfloat16), whh_ref[1],
                            preferred_element_type=jnp.float32)
                  + b_ref[1])
        h1n, c1n = cell(gates1, c1)
        seq_sc[s] = h1n
        return h1n, c1n

    zero = jnp.zeros((BB, H), jnp.float32)
    # Prologue: layer-0 @ t=0 (h0 == 0, so gates are just gx[0]).
    h0, c0 = cell(gx_sc[0], zero)

    # Wavefront main loop: per iteration compute layer-1 @ t-1 and layer-0 @ t.
    # Both read the *old* h0, so the two h-chains are independent and their
    # matmul + EUP latencies overlap. h/c stay in registers (loop carry).
    def wave(t, carry):
        h0, c0, h1, c1 = carry
        h1n, c1n = l1_step(t - 1, h0, h1, c1)
        h0n, c0n = l0_step(t, h0, c0)
        return (h0n, c0n, h1n, c1n)

    h0, c0, h1, c1 = lax.fori_loop(1, T, wave, (h0, c0, zero, zero),
                                   unroll=min(8, max(T - 1, 1)))
    # Epilogue: layer-1 @ t = T-1.
    l1_step(T - 1, h0, h1, c1)

    # torch.mean / torch.var(unbiased) over time, concat, Linear + ReLU,
    # F.normalize(p=2, eps=1e-12). Concat avoided by splitting the FC matmul.
    # NOTE: T >= 2 required (torch.var unbiased divides by T-1).
    seq = seq_sc[...]                                      # (T, BB, H) f32
    mean = jnp.sum(seq, axis=0) * (1.0 / T)                # (BB, H)
    diff = seq - mean[None]
    var = jnp.sum(diff * diff, axis=0) * (1.0 / (T - 1))   # unbiased
    wfc = wfc_ref[...]                                     # (2H, F)
    z = (jnp.dot(mean, wfc[:H], preferred_element_type=jnp.float32)
         + jnp.dot(var, wfc[H:], preferred_element_type=jnp.float32)
         + bfc_ref[...])
    z = jnp.maximum(z, 0.0)                                # FC ReLU
    ssq = jnp.sum(z * z, axis=1, keepdims=True)
    # ||z|| clamped at eps=1e-12  <=>  ssq clamped at 1e-24; rsqrt on the EUP.
    out_ref[...] = (z * lax.rsqrt(jnp.maximum(ssq, 1e-24))).astype(out_ref.dtype)


# ----------------------------------------------------------------------------
# Wrapper (layout transforms + parameter packing in plain JAX)
# ----------------------------------------------------------------------------
def pretrain_model6_forward(params, x):
    B, Cin, Win = x.shape
    K, Cout, H, L, F = 3, 256, 256, 2, 128
    T = Win // 3
    KCP = 128                               # K*Cin = 120, lane-padded to 128

    # Generation-aware batch blocking:
    #  * single-TC chips (v5e/v6e): grid is a sequential loop -> one full-batch
    #    block (splitting would re-run the serial LSTM recurrence).
    #  * v7x (2 TensorCores): two parallel blocks, one per core, provided each
    #    block's batch dim stays a multiple of 8 (keeps (8,128) tiling legal).
    try:
        kind = jax.devices()[0].device_kind.lower()
    except Exception:  # pragma: no cover
        kind = ""
    two_tc = "v7" in kind
    nblk = 2 if (two_tc and B % 2 == 0 and (B // 2) % 8 == 0) else 1
    BB = B // nblk

    # --- im2col, time-major: (W, B, K*Cin) padded to (W, B, 128)
    x_w = jnp.transpose(x, (2, 0, 1))                         # (W, B, Cin)
    x_p = jnp.pad(x_w, ((1, 1), (0, 0), (0, 0)))              # (W+2, B, Cin)
    x_col = jnp.concatenate([x_p[k:k + Win] for k in range(K)], axis=-1)
    x_col = jnp.pad(x_col, ((0, 0), (0, 0), (0, KCP - K * Cin)))

    # conv weight (Cout, Cin, K) -> (K*Cin, Cout), matching window (k, cin)
    # order; bf16 for a single-pass MXU matmul.
    w_col = jnp.transpose(params["conv_w"], (2, 1, 0)).reshape(K * Cin, Cout)
    w_col = jnp.pad(w_col, ((0, KCP - K * Cin), (0, 0))).astype(jnp.bfloat16)

    # fold conv bias + BatchNorm(eval) into one scale/shift
    inv = params["bn_gamma"] / jnp.sqrt(params["bn_var"] + 1e-5)
    scale = inv.reshape(1, Cout)
    shift = (params["bn_beta"]
             + (params["conv_b"] - params["bn_mean"]) * inv).reshape(1, Cout)

    pooled = pl.pallas_call(
        conv_bn_relu_pool_kernel,
        out_shape=jax.ShapeDtypeStruct((T, B, Cout), jnp.float32),
        grid=(nblk,),
        in_specs=[
            pl.BlockSpec((Win, BB, KCP), lambda b: (0, b, 0)),
            pl.BlockSpec((KCP, Cout), lambda b: (0, 0)),
            pl.BlockSpec((1, Cout), lambda b: (0, 0)),
            pl.BlockSpec((1, Cout), lambda b: (0, 0)),
        ],
        out_specs=pl.BlockSpec((T, BB, Cout), lambda b: (0, b, 0)),
        compiler_params=pltpu.CompilerParams(dimension_semantics=("parallel",)),
    )(x_col, w_col, scale, shift)

    # Dropout(0.05) is identity at inference time.
    # TODO(synk): training-mode stochastic dropout (p=0.05) not implemented.

    wih = jnp.stack([params[f"w_ih_{l}"].T for l in range(L)]).astype(jnp.bfloat16)
    whh = jnp.stack([params[f"w_hh_{l}"].T for l in range(L)]).astype(jnp.bfloat16)
    bias = jnp.stack([(params[f"b_ih_{l}"] + params[f"b_hh_{l}"]).reshape(1, 4 * H)
                      for l in range(L)])
    wfc = params["fc_w"].T                       # (2H, F)
    bfc = params["fc_b"].reshape(1, F)

    # Explicit VMEM budget (double-buffered inputs + scratch), capped at the
    # physical VMEM of the target generation (64 MiB on v7x).
    vmem_est = (2 * T * BB * H * 4                      # x block x2
                + 2 * 2 * L * H * 4 * H * 2             # wih + whh blocks x2
                + 2 * L * 4 * H * 4                     # bias x2
                + 2 * 2 * H * F * 4 + 2 * F * 4         # fc weight/bias x2
                + 2 * BB * F * 4                        # out block x2
                + T * BB * 4 * H * 4                    # gx scratch
                + T * BB * H * 4)                       # seq scratch
    vmem_cap = (64 << 20) if two_tc else (128 << 20)
    vmem_limit = int(min(max(2 * vmem_est, 32 << 20), vmem_cap))

    out = pl.pallas_call(
        lstm_statpool_fc_kernel,
        out_shape=jax.ShapeDtypeStruct((B, F), jnp.float32),
        grid=(nblk,),                            # 2 blocks => both TCs on v7x
        in_specs=[
            pl.BlockSpec((T, BB, H), lambda b: (0, b, 0)),
            pl.BlockSpec((L, H, 4 * H), lambda b: (0, 0, 0)),
            pl.BlockSpec((L, H, 4 * H), lambda b: (0, 0, 0)),
            pl.BlockSpec((L, 1, 4 * H), lambda b: (0, 0, 0)),
            pl.BlockSpec((2 * H, F), lambda b: (0, 0)),
            pl.BlockSpec((1, F), lambda b: (0, 0)),
        ],
        out_specs=pl.BlockSpec((BB, F), lambda b: (b, 0)),
        scratch_shapes=[
            pltpu.VMEM((T, BB, 4 * H), jnp.float32),   # hoisted layer-0 gates
            pltpu.VMEM((T, BB, H), jnp.float32),       # layer-1 output sequence
        ],
        compiler_params=pltpu.CompilerParams(
            dimension_semantics=("parallel",),
            vmem_limit_bytes=vmem_limit),
    )(pooled, wih, whh, bias, wfc, bfc)
    return out


# ----------------------------------------------------------------------------
# Deterministic parameter initialization (mirrors the PyTorch __init__)
# ----------------------------------------------------------------------------
def init_params(key):
    keys = jax.random.split(key, 12)
    Cin, K, Cout, H, F = 40, 3, 256, 256, 128
    p = {}
    # Conv1d(40, 256, 3): init_layer (He-uniform), bias = 0
    n = Cin * K
    scale = math.sqrt(2.0 / n) * math.sqrt(3.0)
    p["conv_w"] = jax.random.uniform(keys[0], (Cout, Cin, K), jnp.float32,
                                     -scale, scale)
    p["conv_b"] = jnp.zeros((Cout,), jnp.float32)
    # BatchNorm1d(256): init_bn + fresh running stats (inference semantics)
    p["bn_gamma"] = jnp.ones((Cout,), jnp.float32)
    p["bn_beta"] = jnp.zeros((Cout,), jnp.float32)
    p["bn_mean"] = jnp.zeros((Cout,), jnp.float32)
    p["bn_var"] = jnp.ones((Cout,), jnp.float32)
    # LSTM(256, 256, num_layers=2): PyTorch default U(-1/sqrt(H), 1/sqrt(H))
    k = 1.0 / math.sqrt(H)
    for l in range(2):
        p[f"w_ih_{l}"] = jax.random.uniform(keys[1 + 4 * l], (4 * H, H),
                                            jnp.float32, -k, k)
        p[f"w_hh_{l}"] = jax.random.uniform(keys[2 + 4 * l], (4 * H, H),
                                            jnp.float32, -k, k)
        p[f"b_ih_{l}"] = jax.random.uniform(keys[3 + 4 * l], (4 * H,),
                                            jnp.float32, -k, k)
        p[f"b_hh_{l}"] = jax.random.uniform(keys[4 + 4 * l], (4 * H,),
                                            jnp.float32, -k, k)
    # FullyConnected(512 -> 128, ReLU): init_layer, bias = 0
    n = 2 * H
    scale = math.sqrt(2.0 / n) * math.sqrt(3.0)
    p["fc_w"] = jax.random.uniform(keys[9], (F, 2 * H), jnp.float32,
                                   -scale, scale)
    p["fc_b"] = jnp.zeros((F,), jnp.float32)
    return p


# ----------------------------------------------------------------------------
# Pure-JAX reference (correctness check)
# ----------------------------------------------------------------------------
def reference_forward(params, x):
    B, Cin, Win = x.shape
    H = 256
    x_pad = jnp.pad(x, ((0, 0), (0, 0), (1, 1)))
    y = lax.conv_general_dilated(x_pad, params["conv_w"], (1,), "VALID",
                                 dimension_numbers=("NCH", "OIH", "NCH"))
    y = y + params["conv_b"][None, :, None]
    inv = params["bn_gamma"] / jnp.sqrt(params["bn_var"] + 1e-5)
    y = (y - params["bn_mean"][None, :, None]) * inv[None, :, None] \
        + params["bn_beta"][None, :, None]
    y = jnp.maximum(y, 0.0)
    T = Win // 3
    y = y[:, :, :T * 3].reshape(B, 256, T, 3).max(axis=-1)
    seq = jnp.transpose(y, (0, 2, 1))                    # (B, T, 256)
    for l in range(2):
        wih, whh = params[f"w_ih_{l}"], params[f"w_hh_{l}"]
        b = params[f"b_ih_{l}"] + params[f"b_hh_{l}"]

        def step(carry, x_t, wih=wih, whh=whh, b=b):
            h, c = carry
            gates = x_t @ wih.T + h @ whh.T + b
            i = jax.nn.sigmoid(gates[:, :H])
            f = jax.nn.sigmoid(gates[:, H:2 * H])
            g = jnp.tanh(gates[:, 2 * H:3 * H])
            o = jax.nn.sigmoid(gates[:, 3 * H:])
            c = f * c + i * g
            h = o * jnp.tanh(c)
            return (h, c), h

        init = (jnp.zeros((B, H), jnp.float32), jnp.zeros((B, H), jnp.float32))
        _, hs = lax.scan(step, init, jnp.transpose(seq, (1, 0, 2)))
        seq = jnp.transpose(hs, (1, 0, 2))
    mean = jnp.mean(seq, axis=1)
    var = jnp.var(seq, axis=1, ddof=1)          # torch.var default: unbiased
    feat = jnp.concatenate([mean, var], axis=1)
    z = jnp.maximum(feat @ params["fc_w"].T + params["fc_b"], 0.0)
    nrm = jnp.sqrt(jnp.sum(z * z, axis=1, keepdims=True))
    return z / jnp.maximum(nrm, 1e-12)


if __name__ == "__main__":
    key = jax.random.PRNGKey(0)
    pkey, xkey = jax.random.split(key)
    params = init_params(pkey)

    # small example consistent with the module: (batch=2, mel=40, width=24) -> T=8
    B, Cin, Win = 2, 40, 24
    x = jax.random.normal(xkey, (B, Cin, Win), jnp.float32)

    out = jax.block_until_ready(pretrain_model6_forward(params, x))
    ref = reference_forward(params, x)
    assert out.shape == (B, 128), out.shape
    # bf16 MXU operands in conv + LSTM => looser tolerance than pure f32.
    assert bool(jnp.allclose(out, ref, atol=3e-2, rtol=3e-2)), (out, ref)
    print("KERNEL_OK")
</pallas_src>

<mosaic_0001>
module attributes {stable_mosaic.version = 11 : i64} {
  func.func @conv_bn_relu_pool_kernel(%arg0: i32, %arg1: memref<24x2x128xf32, #tpu.memory_space<vmem>>, %arg2: memref<128x256xbf16, #tpu.memory_space<vmem>>, %arg3: memref<1x256xf32, #tpu.memory_space<vmem>>, %arg4: memref<1x256xf32, #tpu.memory_space<vmem>>, %arg5: memref<8x2x256xf32, #tpu.memory_space<vmem>>) attributes {dimension_semantics = [#tpu.dimension_semantics<parallel>], iteration_bounds = array<i64: 1>, scalar_prefetch = 0 : i64, scratch_operands = 0 : i64, tpu.core_type = #tpu.core_type<tc>, window_params = [{transform_indices = @transform_0, window_bounds = array<i64: 24, 2, 128>}, {pipeline_mode = #tpu.pipeline_mode<synchronous>, transform_indices = @transform_1, window_bounds = array<i64: 128, 256>}, {pipeline_mode = #tpu.pipeline_mode<synchronous>, transform_indices = @transform_2, window_bounds = array<i64: 1, 256>}, {pipeline_mode = #tpu.pipeline_mode<synchronous>, transform_indices = @transform_3, window_bounds = array<i64: 1, 256>}, {transform_indices = @transform_4, window_bounds = array<i64: 8, 2, 256>}]} {
    %c0 = arith.constant 0 : index
    %c0_0 = arith.constant 0 : index
    %c0_1 = arith.constant 0 : index
    %0 = vector.load %arg1[%c0, %c0_0, %c0_1] : memref<24x2x128xf32, #tpu.memory_space<vmem>>, vector<24x2x128xf32>
    %1 = vector.shape_cast %0 : vector<24x2x128xf32> to vector<48x128xf32>
    %2 = arith.truncf %1 : vector<48x128xf32> to vector<48x128xbf16>
    %c0_2 = arith.constant 0 : index
    %c0_3 = arith.constant 0 : index
    %3 = vector.load %arg2[%c0_2, %c0_3] : memref<128x256xbf16, #tpu.memory_space<vmem>>, vector<128x256xbf16>
    %cst = arith.constant dense<0.000000e+00> : vector<48x256xf32>
    %4 = tpu.matmul %2, %3, %cst {dimension_numbers = #tpu.dot_dimension_numbers<[1], [0], [0], [1], [0, 0, 1, 1], [], []>} : vector<48x128xbf16>, vector<128x256xbf16>, vector<48x256xf32> -> vector<48x256xf32>
    %c0_4 = arith.constant 0 : index
    %c0_5 = arith.constant 0 : index
    %5 = vector.load %arg3[%c0_4, %c0_5] : memref<1x256xf32, #tpu.memory_space<vmem>>, vector<1x256xf32>
    %6 = vector.broadcast %5 : vector<1x256xf32> to vector<48x256xf32>
    %7 = arith.mulf %4, %6 : vector<48x256xf32>
    %c0_6 = arith.constant 0 : index
    %c0_7 = arith.constant 0 : index
    %8 = vector.load %arg4[%c0_6, %c0_7] : memref<1x256xf32, #tpu.memory_space<vmem>>, vector<1x256xf32>
    %9 = vector.broadcast %8 : vector<1x256xf32> to vector<48x256xf32>
    %10 = arith.addf %7, %9 : vector<48x256xf32>
    %cst_8 = arith.constant 0.000000e+00 : f32
    %11 = vector.broadcast %cst_8 : f32 to vector<48x256xf32>
    %12 = arith.maximumf %10, %11 : vector<48x256xf32>
    %13 = vector.shape_cast %12 : vector<48x256xf32> to vector<8x3x2x256xf32>
    %14 = vector.extract_strided_slice %13 {offsets = [0, 0, 0, 0], sizes = [8, 1, 2, 256], strides = [1, 1, 1, 1]} : vector<8x3x2x256xf32> to vector<8x1x2x256xf32>
    %15 = vector.shape_cast %14 : vector<8x1x2x256xf32> to vector<8x2x256xf32>
    %16 = vector.extract_strided_slice %13 {offsets = [0, 1, 0, 0], sizes = [8, 1, 2, 256], strides = [1, 1, 1, 1]} : vector<8x3x2x256xf32> to vector<8x1x2x256xf32>
    %17 = vector.shape_cast %16 : vector<8x1x2x256xf32> to vector<8x2x256xf32>
    %18 = arith.maximumf %15, %17 : vector<8x2x256xf32>
    %19 = vector.extract_strided_slice %13 {offsets = [0, 2, 0, 0], sizes = [8, 1, 2, 256], strides = [1, 1, 1, 1]} : vector<8x3x2x256xf32> to vector<8x1x2x256xf32>
    %20 = vector.shape_cast %19 : vector<8x1x2x256xf32> to vector<8x2x256xf32>
    %21 = arith.maximumf %18, %20 : vector<8x2x256xf32>
    %c0_9 = arith.constant 0 : index
    %c0_10 = arith.constant 0 : index
    %c0_11 = arith.constant 0 : index
    %22 = vector.load %arg5[%c0_9, %c0_10, %c0_11] : memref<8x2x256xf32, #tpu.memory_space<vmem>>, vector<8x2x256xf32>
    tpu.vector_store %arg5[%c0_9, %c0_10, %c0_11], %21 {strides = array<i32>} : memref<8x2x256xf32, #tpu.memory_space<vmem>>, vector<8x2x256xf32>,
    return
  }
  func.func @transform_0(%arg0: i32) -> (i32, i32, i32) {
    %c0_i32 = arith.constant 0 : i32
    %c0_i32_0 = arith.constant 0 : i32
    %c0_i32_1 = arith.constant 0 : i32
    return %c0_i32, %arg0, %c0_i32_0 : i32, i32, i32
  }
  func.func @transform_1(%arg0: i32) -> (i32, i32) {
    %c0_i32 = arith.constant 0 : i32
    %c0_i32_0 = arith.constant 0 : i32
    %c0_i32_1 = arith.constant 0 : i32
    return %c0_i32, %c0_i32_0 : i32, i32
  }
  func.func @transform_2(%arg0: i32) -> (i32, i32) {
    %c0_i32 = arith.constant 0 : i32
    %c0_i32_0 = arith.constant 0 : i32
    %c0_i32_1 = arith.constant 0 : i32
    return %c0_i32, %c0_i32_0 : i32, i32
  }
  func.func @transform_3(%arg0: i32) -> (i32, i32) {
    %c0_i32 = arith.constant 0 : i32
    %c0_i32_0 = arith.constant 0 : i32
    %c0_i32_1 = arith.constant 0 : i32
    return %c0_i32, %c0_i32_0 : i32, i32
  }
  func.func @transform_4(%arg0: i32) -> (i32, i32, i32) {
    %c0_i32 = arith.constant 0 : i32
    %c0_i32_0 = arith.constant 0 : i32
    %c0_i32_1 = arith.constant 0 : i32
    return %c0_i32, %arg0, %c0_i32_0 : i32, i32, i32
  }
}

</mosaic_0001>

<bundles_post_ra>
// kernel: tpu_custom_call.1
= control target key start
LH: loop header
LB: loop body
LE: loop exit
PB: predicated region body
PF: predicated region fallthrough
CT: control target
= control target key end

     0   :  { %9 = vsyncpa [#allocation3], 0  ;;  %s894_s0 = inlined_call_operand.hbm [shape: f32[24,2,128], index: 0, kind: input, shape index: {}]   ;;  %s895_s1 = inlined_call_operand.hbm [shape: bf16[128,256], index: 1, kind: input, shape index: {}]   ;;  %s896_s2 = inlined_call_operand.vmem [shape: f32[1,256], index: 2, kind: input, shape index: {}]   ;;  %s897_s3 = inlined_call_operand.vmem [shape: f32[1,256], index: 3, kind: input, shape index: {}]   ;;  %s898_s4 = inlined_call_operand.hbm [shape: f32[8,2,256], index: 4, kind: output, shape index: {}]  }
   0x1   :  { %10 = vsyncpa [#allocation6], 0 }
   0x2   :  { %11 = vsyncpa [#allocation4], 0  ;;  %s750_s15 = smov [#allocation2]   ;;  %s678_s19 = scalar_lea.hbm %s894_s0, 768 }
   0x3   :  { %s17_s16 = sshll.u32 %s750_s15, 4  ;;  %p679_p0 = scmp.ne.s32.totalorder %s894_s0, %s678_s19  ;;  %s18_s16 = int_to_ptr.vmem [resolvable:$true] %s17_s16 }
   0x4   :  { %p682_p1 = scmp.lt.u32.totalorder %s678_s19, %s894_s0 }
   0x6   :  { %p684_p2 = pnand %p682_p1, %p679_p0 }
   0x8   :  { %687 = shalt.err (!%p684_p2)
}
   0x9   :  { %s688_s24 = scalar_lea.vmem %s18_s16, 768  ;;  %p693_p4 = scmp.lt.s32.totalorder %s18_s16, %s18_s16 }
   0xa   :  { %p689_p3 = scmp.ne.s32.totalorder %s18_s16, %s688_s24  ;;  %p694_p5 = scmp.lt.s32.totalorder %s688_s24, %s688_s24 }
   0xc   :  { %p695_p6 = por %p694_p5, %p693_p4 }
   0xe   :  { %p696_p7 = pnand %p695_p6, %p689_p3 }
  0x10   :  { %699 = shalt.err (!%p696_p7)
}
  0x11   :  { %s751_s25 = smov 32   ;;  %s752_s26 = smov 2  }
  0x12   :  { %23 = dma.hbm_to_vmem [thread:$0]  %s894_s0, 768, %s18_s16, [#allocation3], %s751_s25, %s751_s25, %s752_s26  }
  0x13   :  { %s753_s29 = smov [#allocation5]   ;;  %s700_s7 = scalar_lea.hbm %s895_s1, 2048 }
  0x14   :  { %s29_s30 = sshll.u32 %s753_s29, 4  ;;  %p701_p8 = scmp.ne.s32.totalorder %s895_s1, %s700_s7  ;;  %s30_s30 = int_to_ptr.vmem [resolvable:$true] %s29_s30 }
  0x15   :  { %p704_p9 = scmp.lt.u32.totalorder %s700_s7, %s895_s1 }
  0x17   :  { %p706_p10 = pnand %p704_p9, %p701_p8 }
  0x19   :  { %709 = shalt.err (!%p706_p10)
}
  0x1a   :  { %s710_s12 = scalar_lea.vmem %s30_s30, 2048  ;;  %p715_p12 = scmp.lt.s32.totalorder %s30_s30, %s30_s30 }
  0x1b   :  { %p711_p11 = scmp.ne.s32.totalorder %s30_s30, %s710_s12  ;;  %p716_p13 = scmp.lt.s32.totalorder %s710_s12, %s710_s12 }
  0x1d   :  { %p717_p0 = por %p716_p13, %p715_p12 }
  0x1f   :  { %p718_p1 = pnand %p717_p0, %p711_p11 }
  0x21   :  { %721 = shalt.err (!%p718_p1)
}
  0x22   :  { %s754_s0 = smov 128   ;;  %s755_s13 = smov 8  }
  0x23   :  { %35 = dma.hbm_to_vmem [thread:$0]  %s895_s1, 2048, %s30_s30, [#allocation6], %s754_s0, %s754_s0, %s755_s13  }
  0x24   :  { %744 = dma.done.wait [#allocation3], 768  }
  0x25   :  { %745 = vsyncadd [#allocation3], 4294966528 }
  0x26   :  { %746 = dma.done.wait [#allocation6], 2048  }
  0x27   :  { %747 = vsyncadd [#allocation6], 4294965248  ;;  %v756_v0 = vmov 0   ;;  %v654_v1 = vld [vmem:[#allocation5 + $0x4] ss:$8 sps:$4 sm:$0xff]   ;;  %v100_v7 = vlaneseq }
  0x28   :  { %334 = vmatprep.mubr.bf16.mxu0 %v756_v0  ;;  %344 = vmatprep.mubr.bf16.mxu1 %v756_v0  ;;  %v656_v2 = vld [vmem:[#allocation5] ss:$8 sps:$4 sm:$0xff]   ;;  %v657_v3 = vld [vmem:[#allocation5 + $0x14] ss:$8 sps:$4 sm:$0xff]   ;;  %v659_v4 = vld [vmem:[#allocation5 + $0x10] ss:$8 sps:$4 sm:$0xff]  }
  0x29   :  { %302 = vmatprep.subr.bf16.mxu0 %v654_v1  ;;  %627 = vmatprep.subr.bf16.mxu1 %v654_v1  ;;  %v660_v5 = vld [vmem:[#allocation5 + $0x24] ss:$8 sps:$4 sm:$0xff]   ;;  %v662_v6 = vld [vmem:[#allocation5 + $0x20] ss:$8 sps:$4 sm:$0xff]   ;;  %v663_v8 = vld [vmem:[#allocation5 + $0x34] ss:$8 sps:$4 sm:$0xff]  }
  0x2a   :  { %303 = vmatpush1.bf16.msra.mxu0 %v656_v2  ;;  %635 = vmatpush1.bf16.msra.mxu1 %v656_v2  ;;  %v757_v9 = vmov 1983009808   ;;  %v665_v11 = vld [vmem:[#allocation5 + $0x30] ss:$8 sps:$4 sm:$0xff]   ;;  %v666_v12 = vld [vmem:[#allocation5 + $0x44] ss:$8 sps:$4 sm:$0xff]  }
  0x2b   :  { %304 = vmatprep.subr.bf16.mxu0 %v657_v3  ;;  %628 = vmatprep.subr.bf16.mxu1 %v657_v3  ;;  %v98_v10 = vunpack.c.l.s4 %v757_v9  ;;  %v812_v13 = vshrl.u32 %v100_v7, 7  ;;  %v47_v14 = vld [vmem:[#allocation2] sm:$0x3]  ;;  %v48_v15 = vld [vmem:[#allocation2 + $0x2] sm:$0x3] }
  0x2c   :  { %v49_v16 = vld [vmem:[#allocation2 + $0x4] sm:$0x3]  ;;  %v50_v17 = vld [vmem:[#allocation2 + $0x6] sm:$0x3]  ;;  %v51_v18 = vld [vmem:[#allocation2 + $0x8] sm:$0x3]  ;;  %v95_v34 = vcombine.low %v47_v14, %v48_v15 }
  0x2d   :  { %v52_v19 = vld [vmem:[#allocation2 + $0xa] sm:$0x3]  ;;  %v53_v20 = vld [vmem:[#allocation2 + $0xc] sm:$0x3]  ;;  %v99_v21 = vunpack.c.0.s8 %v98_v10  ;;  %v668_v22 = vld [vmem:[#allocation5 + $0x40] ss:$8 sps:$4 sm:$0xff]   ;;  %v96_v35 = vcombine.low %v49_v16, %v50_v17 }
  0x2e   :  { %305 = vmatpush1.bf16.msra.mxu0 %v659_v4  ;;  %636 = vmatpush1.bf16.msra.mxu1 %v659_v4  ;;  %v54_v23 = vld [vmem:[#allocation2 + $0xe] sm:$0x3]  ;;  %v55_v24 = vld [vmem:[#allocation2 + $0x10] sm:$0x3]  ;;  %v56_v25 = vld [vmem:[#allocation2 + $0x12] sm:$0x3]  ;;  %v112_v36 = vcombine.low %v51_v18, %v52_v19 }
  0x2f   :  { %306 = vmatprep.subr.bf16.mxu0 %v660_v5  ;;  %629 = vmatprep.subr.bf16.mxu1 %v660_v5  ;;  %v57_v26 = vld [vmem:[#allocation2 + $0x14] sm:$0x3]  ;;  %v58_v27 = vld [vmem:[#allocation2 + $0x16] sm:$0x3]  ;;  %v59_v28 = vld [vmem:[#allocation2 + $0x18] sm:$0x3]  ;;  %v815_v33 = vsub.s32 %v99_v21, %v812_v13  ;;  %v113_v37 = vcombine.low %v53_v20, %v54_v23  ;;  %v129_v38 = vcombine.low %v55_v24, %v56_v25 }
  0x30   :  { %v60_v29 = vld [vmem:[#allocation2 + $0x1a] sm:$0x3]  ;;  %v61_v30 = vld [vmem:[#allocation2 + $0x1c] sm:$0x3]  ;;  %v62_v31 = vld [vmem:[#allocation2 + $0x1e] sm:$0x3]  ;;  %v130_v39 = vcombine.low %v57_v26, %v58_v27 }
  0x31   :  { %v669_v32 = vld [vmem:[#allocation5 + $0x54] ss:$8 sps:$4 sm:$0xff]   ;;  %v146_v40 = vcombine.low %v59_v28, %v60_v29  ;;  %v147_v41 = vcombine.low %v61_v30, %v62_v31  ;;  %v671_v42 = vld [vmem:[#allocation5 + $0x50] ss:$8 sps:$4 sm:$0xff]   ;;  %v672_v43 = vld [vmem:[#allocation5 + $0x64] ss:$8 sps:$4 sm:$0xff]   ;;  %v103_v45 = vrot.slane %v95_v34, %v815_v33  ;;  %v110_v46 = vrot.slane %v96_v35, %v815_v33 }
  0x32   :  { %307 = vmatpush1.bf16.msra.mxu0 %v662_v6  ;;  %637 = vmatpush1.bf16.msra.mxu1 %v662_v6  ;;  %v674_v44 = vld [vmem:[#allocation5 + $0x60] ss:$8 sps:$4 sm:$0xff]   ;;  %v120_v47 = vrot.slane %v112_v36, %v815_v33  ;;  %v127_v48 = vrot.slane %v113_v37, %v815_v33  ;;  %v63_v49 = vld [vmem:[#allocation2 + $0x20] sm:$0x3]  ;;  %v64_v50 = vld [vmem:[#allocation2 + $0x22] sm:$0x3]  ;;  %v137_v51 = vrot.slane %v129_v38, %v815_v33 }
  0x33   :  { %308 = vmatprep.subr.bf16.mxu0 %v663_v8  ;;  %630 = vmatprep.subr.bf16.mxu1 %v663_v8  ;;  %v144_v52 = vrot.slane %v130_v39, %v815_v33  ;;  %v154_v53 = vrot.slane %v146_v40, %v815_v33  ;;  %v161_v54 = vrot.slane %v147_v41, %v815_v33  ;;  %v65_v55 = vld [vmem:[#allocation2 + $0x24] sm:$0x3]  ;;  %v66_v56 = vld [vmem:[#allocation2 + $0x26] sm:$0x3]  ;;  %v67_v57 = vld [vmem:[#allocation2 + $0x28] sm:$0x3] }
  0x34   :  { %v68_v58 = vld [vmem:[#allocation2 + $0x2a] sm:$0x3]  ;;  %v69_v59 = vld [vmem:[#allocation2 + $0x2c] sm:$0x3]  ;;  %v70_v60 = vld [vmem:[#allocation2 + $0x2e] sm:$0x3]  ;;  %v111_v62 = vcombine.low %v103_v45, %v110_v46  ;;  %v128_v63 = vcombine.low %v120_v47, %v127_v48  ;;  %v163_v1 = vcombine.low %v63_v49, %v64_v50  ;;  %v164_v2 = vcombine.low %v65_v55, %v66_v56 }
  0x35   :  { %v675_v61 = vld [vmem:[#allocation5 + $0x74] ss:$8 sps:$4 sm:$0xff]   ;;  %v145_v3 = vcombine.low %v137_v51, %v144_v52  ;;  %v162_v4 = vcombine.low %v154_v53, %v161_v54  ;;  %v180_v5 = vcombine.low %v67_v57, %v68_v58  ;;  %v181_v6 = vcombine.low %v69_v59, %v70_v60  ;;  %v677_v7 = vld [vmem:[#allocation5 + $0x70] ss:$8 sps:$4 sm:$0xff]  }
  0x36   :  { %309 = vmatpush1.bf16.msra.mxu0 %v665_v11  ;;  %638 = vmatpush1.bf16.msra.mxu1 %v665_v11  ;;  %v203_v8 = vpack.c.bf16 %v128_v63, %v111_v62  ;;  %v171_v9 = vrot.slane %v163_v1, %v815_v33  ;;  %v178_v11 = vrot.slane %v164_v2, %v815_v33  ;;  %v369_v18 = vsub.s32 0, %v812_v13  ;;  %v365_v19 = vld [vmem:[%s896_s2] sm:$0x3]  ;;  %s758_s2 = smov [#allocation7]  }
  0x37   :  { %310 = vmatprep.subr.bf16.mxu0 %v666_v12  ;;  %631 = vmatprep.subr.bf16.mxu1 %v666_v12  ;;  %v204_v10 = vpack.c.bf16 %v162_v4, %v145_v3  ;;  %v188_v12 = vrot.slane %v180_v5, %v815_v33  ;;  %v195_v14 = vrot.slane %v181_v6, %v815_v33  ;;  %v373_v20 = vsub.s32 1, %v812_v13  ;;  %v389_v21 = vld [vmem:[%s897_s3] sm:$0x3]  ;;  %s598_s3 = sshll.u32 %s758_s2, 4  ;;  %s599_s3 = int_to_ptr.vmem [resolvable:$true] %s598_s3 }
  0x38   :  { %v179_v15 = vcombine.low %v171_v9, %v178_v11  ;;  %v842_v24 = vrot.slane %v389_v21, %v369_v18  ;;  %s722_s19 = scalar_lea.vmem %s599_s3, 512  ;;  %p727_p3 = scmp.lt.s32.totalorder %s599_s3, %s599_s3 }
  0x39   :  { %v196_v16 = vcombine.low %v188_v12, %v195_v14  ;;  %v840_v23 = vrot.slane %v365_v19, %v373_v20  ;;  %v844_v26 = vrot.slane %v389_v21, %v373_v20  ;;  %p723_p2 = scmp.ne.s32.totalorder %s599_s3, %s722_s19  ;;  %p728_p4 = scmp.lt.s32.totalorder %s722_s19, %s722_s19 }
  0x3a   :  { %311 = vmatpush1.bf16.msra.mxu0 %v668_v22  ;;  %639 = vmatpush1.bf16.msra.mxu1 %v668_v22  ;;  %v838_v22 = vrot.slane %v365_v19, %v369_v18 }
  0x3b   :  { %312 = vmatprep.subr.bf16.mxu0 %v669_v32  ;;  %632 = vmatprep.subr.bf16.mxu1 %v669_v32  ;;  %v205_v17 = vpack.c.bf16 %v196_v16, %v179_v15  ;;  %p729_p5 = por %p728_p4, %p727_p3 }
  0x3d   :  { %p730_p6 = pnand %p729_p5, %p723_p2 }
  0x3e   :  { %313 = vmatpush1.bf16.msra.mxu0 %v671_v42  ;;  %640 = vmatpush1.bf16.msra.mxu1 %v671_v42 }
  0x3f   :  { %314 = vmatprep.subr.bf16.mxu0 %v672_v43  ;;  %633 = vmatprep.subr.bf16.mxu1 %v672_v43 }
  0x42   :  { %315 = vmatpush1.bf16.msra.mxu0 %v674_v44  ;;  %641 = vmatpush1.bf16.msra.mxu1 %v674_v44 }
  0x43   :  { %316 = vmatprep.subr.bf16.mxu0 %v675_v61  ;;  %634 = vmatprep.subr.bf16.mxu1 %v675_v61 }
  0x46   :  { %317 = vmatpush1.bf16.msra.mxu0 %v677_v7  ;;  %642 = vmatpush1.bf16.msra.mxu1 %v677_v7 }
  0x49   :  { %335 = vmatmul.mubr.bf16.vlgmr.msra.gmra.mrb[0].mxu0 %v203_v8  ;;  %345 = vmatmul.mubr.bf16.vlgmr.msra.gmra.mrb[0].mxu1 %v204_v10 }
  0x4a   :  { %354 = vmatprep.mubr.bf16.mxu1 %v756_v0 }
  0x51   :  { %355 = vmatmul.mubr.bf16.gmra.mrb[4].mxu1 %v205_v17 }
 0x11c   :  { %v336_v0 = vpop.f32.mrb[0].mxu0  ;;  %v346_v25 = vpop.f32.mrb[0].mxu1 }
 0x11d   :  { %v377_v27 = vmul.f32 %v838_v22, %v336_v0  ;;  %v381_v28 = vmul.f32 %v838_v22, %v346_v25  ;;  %v338_v29 = vpop.f32.mrb[1].mxu0  ;;  %v348_v13 = vpop.f32.mrb[1].mxu1 }
 0x11e   :  { %v378_v30 = vmul.f32 %v840_v23, %v338_v29  ;;  %v382_v31 = vmul.f32 %v840_v23, %v348_v13  ;;  %v340_v32 = vpop.f32.mrb[2].mxu0  ;;  %v350_v34 = vpop.f32.mrb[2].mxu1 }
 0x11f   :  { %v401_v35 = vadd.f32 %v842_v24, %v377_v27  ;;  %v405_v36 = vadd.f32 %v842_v24, %v381_v28  ;;  %v379_v37 = vmul.f32 %v838_v22, %v340_v32  ;;  %v383_v38 = vmul.f32 %v838_v22, %v350_v34  ;;  %v342_v39 = vpop.f32.mrb[3].mxu0  ;;  %v352_v40 = vpop.f32.mrb[3].mxu1 }
 0x120   :  { %v402_v41 = vadd.f32 %v844_v26, %v378_v30  ;;  %v406_v42 = vadd.f32 %v844_v26, %v382_v31  ;;  %v380_v43 = vmul.f32 %v840_v23, %v342_v39  ;;  %v384_v44 = vmul.f32 %v840_v23, %v352_v40 }
 0x121   :  { %v413_v45 = vmax.f32 %v401_v35, 0.0  ;;  %v417_v46 = vmax.f32 %v405_v36, 0.0  ;;  %v403_v47 = vadd.f32 %v842_v24, %v379_v37  ;;  %v407_v48 = vadd.f32 %v842_v24, %v383_v38 }
 0x122   :  { %v414_v49 = vmax.f32 %v402_v41, 0.0  ;;  %v418_v50 = vmax.f32 %v406_v42, 0.0  ;;  %v404_v51 = vadd.f32 %v844_v26, %v380_v43  ;;  %v408_v52 = vadd.f32 %v844_v26, %v384_v44 }
 0x123   :  { %v415_v53 = vmax.f32 %v403_v47, 0.0  ;;  %v419_v54 = vmax.f32 %v407_v48, 0.0 }
 0x124   :  { %v437_v55 = vcombine.low %v413_v45, %v414_v49  ;;  %v438_v56 = vcombine.high %v413_v45, %v414_v49  ;;  %v473_v57 = vcombine.low %v417_v46, %v418_v50  ;;  %v474_v58 = vcombine.high %v417_v46, %v418_v50  ;;  %v356_v59 = vpop.f32.mrb[4].mxu1 }
 0x125   :  { %v416_v60 = vmax.f32 %v404_v51, 0.0  ;;  %v420_v61 = vmax.f32 %v408_v52, 0.0  ;;  %v385_v62 = vmul.f32 %v838_v22, %v356_v59  ;;  %v358_v63 = vpop.f32.mrb[5].mxu1 }
 0x126   :  { %v445_v1 = vrot.slane %v437_v55, %v815_v33  ;;  %v452_v2 = vrot.slane %v438_v56, %v815_v33  ;;  %v481_v3 = vrot.slane %v473_v57, %v815_v33  ;;  %v488_v4 = vrot.slane %v474_v58, %v815_v33  ;;  %v360_v5 = vpop.f32.mrb[6].mxu1 }
 0x127   :  { %v455_v6 = vcombine.low %v415_v53, %v416_v60  ;;  %v456_v7 = vcombine.high %v415_v53, %v416_v60  ;;  %v491_v8 = vcombine.low %v419_v54, %v420_v61  ;;  %v492_v9 = vcombine.high %v419_v54, %v420_v61  ;;  %v362_v10 = vpop.f32.mrb[7].mxu1 }
 0x128   :  { %v453_v11 = vcombine.high %v445_v1, %v445_v1  ;;  %v454_v12 = vcombine.high %v452_v2, %v452_v2  ;;  %v489_v14 = vcombine.high %v481_v3, %v481_v3  ;;  %v490_v15 = vcombine.high %v488_v4, %v488_v4 }
 0x129   :  { %v463_v16 = vrot.slane %v455_v6, %v815_v33  ;;  %v470_v17 = vrot.slane %v456_v7, %v815_v33  ;;  %v499_v18 = vrot.slane %v491_v8, %v815_v33  ;;  %v409_v21 = vadd.f32 %v842_v24, %v385_v62 }
 0x12a   :  { %v569_v19 = vmax.f32 %v445_v1, %v453_v11  ;;  %v572_v20 = vmax.f32 %v489_v14, %v488_v4  ;;  %v386_v0 = vmul.f32 %v840_v23, %v358_v63  ;;  %v506_v31 = vrot.slane %v492_v9, %v815_v33 }
 0x12b   :  { %v471_v25 = vcombine.high %v463_v16, %v463_v16  ;;  %v472_v27 = vcombine.high %v470_v17, %v470_v17  ;;  %v570_v28 = vmax.f32 %v454_v12, %v463_v16  ;;  %v507_v29 = vcombine.high %v499_v18, %v499_v18 }
 0x12c   :  { %v577_v13 = vmax.f32 %v569_v19, %v452_v2  ;;  %v580_v30 = vmax.f32 %v572_v20, %v490_v15  ;;  %v421_v32 = vmax.f32 %v409_v21, 0.0  ;;  %v410_v37 = vadd.f32 %v844_v26, %v386_v0 }
 0x12d   :  { %v571_v34 = vmax.f32 %v470_v17, %v472_v27  ;;  %v578_v35 = vmax.f32 %v570_v28, %v471_v25  ;;  %v573_v36 = vmax.f32 %v499_v18, %v507_v29  ;;  %v387_v38 = vmul.f32 %v838_v22, %v360_v5 }
 0x12e   :  { %585 = vst [vmem:[#allocation7] sm:$0xf] %v577_v13  ;;  %588 = vst [vmem:[#allocation7 + $0xc] sm:$0xf] %v580_v30  ;;  %v388_v39 = vmul.f32 %v840_v23, %v362_v10  ;;  %v422_v42 = vmax.f32 %v410_v37, 0.0  ;;  %v508_v49 = vcombine.high %v506_v31, %v506_v31 }
 0x12f   :  { %v579_v40 = vmax.f32 %v571_v34, %v481_v3  ;;  %586 = vst [vmem:[#allocation7 + $0x4] sm:$0xf] %v578_v35  ;;  %v581_v41 = vmax.f32 %v573_v36, %v506_v31  ;;  %v411_v43 = vadd.f32 %v842_v24, %v387_v38 }
 0x130   :  { %v412_v44 = vadd.f32 %v844_v26, %v388_v39  ;;  %v509_v45 = vcombine.low %v421_v32, %v422_v42  ;;  %v510_v46 = vcombine.high %v421_v32, %v422_v42 }
 0x131   :  { %587 = vst [vmem:[#allocation7 + $0x8] sm:$0xf] %v579_v40  ;;  %589 = vst [vmem:[#allocation7 + $0x10] sm:$0xf] %v581_v41  ;;  %v423_v47 = vmax.f32 %v411_v43, 0.0 }
 0x132   :  { %v424_v48 = vmax.f32 %v412_v44, 0.0  ;;  %v517_v50 = vrot.slane %v509_v45, %v815_v33  ;;  %v524_v22 = vrot.slane %v510_v46, %v815_v33 }
 0x134   :  { %v527_v23 = vcombine.low %v423_v47, %v424_v48  ;;  %v528_v51 = vcombine.high %v423_v47, %v424_v48  ;;  %v525_v52 = vcombine.high %v517_v50, %v517_v50  ;;  %v526_v53 = vcombine.high %v524_v22, %v524_v22 }
 0x135   :  { %v574_v54 = vmax.f32 %v508_v49, %v517_v50 }
 0x136   :  { %v535_v24 = vrot.slane %v527_v23, %v815_v33  ;;  %v542_v26 = vrot.slane %v528_v51, %v815_v33  ;;  %v575_v55 = vmax.f32 %v524_v22, %v526_v53 }
 0x137   :  { %v582_v56 = vmax.f32 %v574_v54, %v525_v52 }
 0x138   :  { %v543_v57 = vcombine.high %v535_v24, %v535_v24  ;;  %v583_v58 = vmax.f32 %v575_v55, %v535_v24  ;;  %v544_v59 = vcombine.high %v542_v26, %v542_v26 }
 0x139   :  { %590 = vst [vmem:[#allocation7 + $0x14] sm:$0xf] %v582_v56 }
 0x13a   :  { %v576_v60 = vmax.f32 %v543_v57, %v542_v26  ;;  %591 = vst [vmem:[#allocation7 + $0x18] sm:$0xf] %v583_v58 }
 0x13c   :  { %v584_v61 = vmax.f32 %v576_v60, %v544_v59 }
 0x13e   :  { %592 = vst [vmem:[#allocation7 + $0x1c] sm:$0xf] %v584_v61 }
 0x13f   :  { %733 = shalt.err (!%p730_p6)
}
 0x140   :  { %s734_s22 = scalar_lea.hbm %s898_s4, 512 }
 0x141   :  { %p735_p7 = scmp.ne.s32.totalorder %s898_s4, %s734_s22  ;;  %p738_p8 = scmp.lt.u32.totalorder %s734_s22, %s898_s4 }
 0x143   :  { %p740_p9 = pnand %p738_p8, %p735_p7 }
 0x145   :  { %743 = shalt.err (!%p740_p9)
}
 0x146   :  { %s759_s27 = smov 64   ;;  %s760_s28 = smov 4  }
 0x147   :  { %604 = dma.vmem_to_hbm [thread:$0]  %s599_s3, 512, %s898_s4, [#allocation4], %s759_s27, %s759_s27, %s760_s28  }
 0x148   :  { %748 = dma.done.wait [#allocation4], 512  }
 0x149   :  { %749 = vsyncadd [#allocation4], 4294966784 }
 0x14a   :  { %608 = vsyncpa [#allocation3], 1 }
 0x14b   :  { %609 = vsyncpa [#allocation6], 1 }
 0x14c   :  { %610 = vsyncpa [#allocation4], 1 }

</bundles_post_ra>
